<compile_context>
chip_gen: v7x
topology: tpu7x:2x2x1
jax: 0.10.0
libtpu: 0.0.40
codegen_flags: <defaults>
</compile_context>

<pallas_src>
import functools

import jax
import jax.numpy as jnp
from jax.experimental import pallas as pl
from jax.experimental.pallas import tpu as pltpu

LANE = 128        # head output padded to this (lane-dense, unmasked stores)
TILE_M = 512      # row tile for large batches (multiple of 8)
MIN_SPLIT_M = 64  # at/above this row count force >=2 row tiles (v7x megacore)


def _round_up(x, m):
    return (x + m - 1) // m * m


def _cdiv(a, b):
    return -(-a // b)


def _row_tiling(m):
    """Pick (padded_rows, row_tile) for the GEMM grid."""
    if m > TILE_M:
        g = _cdiv(m, TILE_M)
    elif m >= MIN_SPLIT_M:
        g = 2            # >=2 'parallel' tiles so both v7x TensorCores get work
    else:
        g = 1
    tm = _round_up(_cdiv(m, g), 8)
    mp = _round_up(m, tm)
    return mp, tm


# ---------------------------------------------------------------------------
# Pallas kernel: chain of (matmul + bias + activation) layers in one call.
# acts[i] in {"relu", "none", "head"}.  "head" = masked softmax over the first
# `n_actions` lanes (actor policy); the critic value is kept raw in lane
# `n_actions`; remaining lanes are zero padding.
# ---------------------------------------------------------------------------
def _mlp_chain_kernel(*refs, acts, n_actions):
    n_layers = len(acts)
    x_ref = refs[0]
    o_ref = refs[1 + 2 * n_layers]

    h = x_ref[...]                                        # bf16 row tile
    for li in range(n_layers):
        w = refs[1 + 2 * li][...]                         # bf16 [K, N]
        b = refs[2 + 2 * li][...]                         # f32  [1, N]
        z = jnp.dot(h, w, preferred_element_type=jnp.float32) + b
        act = acts[li]
        if act == "relu":
            h = jnp.maximum(z, 0.0).astype(jnp.bfloat16)  # bf16 for next MXU pass
        elif act == "head":
            col = jax.lax.broadcasted_iota(jnp.int32, z.shape, 1)
            is_actor = col < n_actions
            logits = jnp.where(is_actor, z, -jnp.inf)     # mask pad + value lanes
            m = jnp.max(logits, axis=-1, keepdims=True)
            e = jnp.exp(logits - m)                       # masked lanes -> 0
            denom = jnp.sum(e, axis=-1, keepdims=True)
            p = e / denom                                 # exact: rows sum to 1
            h = jnp.where(is_actor, p, z)  # policy in lanes [0,A), value at lane A
        else:  # "none"
            h = z
    o_ref[...] = h.astype(o_ref.dtype)


def pallas_mlp_chain(x, layers, acts, *, n_actions=0, out_dtype=jnp.float32):
    """x: [M, K0].  layers: list of (w [K_i, N_i], b [N_i]).  One pallas_call."""
    M = x.shape[0]
    N_out = layers[-1][0].shape[1]

    Mp, tm = _row_tiling(M)
    if x.dtype != jnp.bfloat16:
        x = x.astype(jnp.bfloat16)          # cast before any padding pass
    if Mp != M:
        x = jnp.pad(x, ((0, Mp - M), (0, 0)))

    args = [x]
    in_specs = [pl.BlockSpec((tm, x.shape[1]), lambda i: (i, 0))]
    for w, b in layers:
        args.append(w.astype(jnp.bfloat16))
        in_specs.append(pl.BlockSpec(w.shape, lambda i: (0, 0)))
        args.append(b.reshape(1, -1).astype(jnp.float32))
        in_specs.append(pl.BlockSpec((1, b.shape[0]), lambda i: (0, 0)))
    # TODO(synk): weight/bias blocks are grid-invariant; pipeline_mode=pl.Buffered(1)
    # would drop their second VMEM buffer (skipped: tiny win, VMEM not a constraint).

    flops = sum(2 * Mp * w.shape[0] * w.shape[1] for w, _ in layers)
    bytes_accessed = (sum(int(a.size) * a.dtype.itemsize for a in args)
                      + Mp * N_out * jnp.dtype(out_dtype).itemsize)
    transcendentals = Mp * N_out if "head" in acts else 0

    out = pl.pallas_call(
        functools.partial(_mlp_chain_kernel, acts=tuple(acts), n_actions=n_actions),
        out_shape=jax.ShapeDtypeStruct((Mp, N_out), out_dtype),
        grid=(Mp // tm,),
        in_specs=in_specs,
        out_specs=pl.BlockSpec((tm, N_out), lambda i: (i, 0)),
        compiler_params=pltpu.CompilerParams(dimension_semantics=("parallel",)),
        cost_estimate=pl.CostEstimate(flops=flops, transcendentals=transcendentals,
                                      bytes_accessed=bytes_accessed),
    )(*args)
    return out[:M] if Mp != M else out


# ---------------------------------------------------------------------------
# Conv2d (valid padding, stride s) via NHWC im2col + Pallas GEMM
# ---------------------------------------------------------------------------
def _im2col_nhwc(x, k, s):
    """x: [B, H, W, C] -> patches [B*Ho*Wo, k*k*C], feature order (kh, kw, c)."""
    # TODO(synk): patch extraction stays in plain JAX (k^2/s^2 activation
    # inflation); in-kernel tap accumulation with strided tap loads into a
    # VMEM accumulator would avoid materializing the patch matrix in HBM.
    B, H, W, C = x.shape
    Ho = (H - k) // s + 1
    Wo = (W - k) // s + 1
    taps = []
    for i in range(k):
        for j in range(k):
            taps.append(x[:, i:i + s * (Ho - 1) + 1:s, j:j + s * (Wo - 1) + 1:s, :])
    p = jnp.stack(taps, axis=3)                       # [B, Ho, Wo, k*k, C]
    return p.reshape(B * Ho * Wo, k * k * C), Ho, Wo


def conv2d_relu(x, w, b, stride):
    """NHWC conv (VALID) + ReLU.  x: [B,H,W,C_in] bf16, w: PyTorch OIHW.
    Output [B, Ho, Wo, C_out] bf16 -- natural channel width (no pad-then-slice),
    reshape back to NHWC is free (row-major), no transposes."""
    C_out, C_in, k, _ = w.shape
    B = x.shape[0]
    patches, Ho, Wo = _im2col_nhwc(x, k, stride)                  # bf16 patches
    w_mat = jnp.transpose(w, (2, 3, 1, 0)).reshape(k * k * C_in, C_out)
    y = pallas_mlp_chain(patches, [(w_mat, b)], ["relu"], out_dtype=jnp.bfloat16)
    return y.reshape(B, Ho, Wo, C_out)


# ---------------------------------------------------------------------------
# ActorCritic forward
# ---------------------------------------------------------------------------
def actor_critic_forward(params, x, n_actions):
    """x: [B, C, H, W] (PyTorch NCHW).  Returns (policy [B, A], value [B, 1])."""
    assert 1 <= n_actions and n_actions + 1 <= LANE
    w3, b3 = params["conv3"]
    wf, bf = params["fc"]
    wa, ba = params["actor"]
    wc, bc = params["critic"]

    # NCHW -> NHWC once, bf16 once; activations stay NHWC bf16 end-to-end.
    h = jnp.transpose(x.astype(jnp.bfloat16), (0, 2, 3, 1))

    h = conv2d_relu(h, *params["conv1"], stride=4)        # [B, H1, W1, 32]
    h = conv2d_relu(h, *params["conv2"], stride=2)        # [B, H2, W2, 64]
    # TODO(synk): for tiny batches conv2 (+ its im2col) could also be fused
    # into the tail pallas_call with static in-kernel tap slices.

    # Fused actor + critic head: one lane-dense [*, 128] output.
    # lanes [0, n_actions) = policy, lane n_actions = value, rest = zero pad.
    pad_h = LANE - n_actions - 1
    w_head = jnp.concatenate(
        [wa, wc, jnp.zeros((wa.shape[0], pad_h), jnp.float32)], axis=1)
    b_head = jnp.concatenate([ba, bc, jnp.zeros((pad_h,), jnp.float32)])

    B, H2, W2, C2 = h.shape
    C3, _, k3, _ = w3.shape
    Ho3, Wo3 = H2 - k3 + 1, W2 - k3 + 1

    if Ho3 == 1 and Wo3 == 1:
        # conv3's window covers the whole conv2 output -> conv3 is a plain GEMM
        # on the (h, w, c)-ordered flatten (no im2col glue).  Fuse
        # conv3 + fc + actor/critic into ONE pallas_call: three chained GEMMs
        # with VMEM-resident intermediates, no HBM round trips for the tail.
        flat = h.reshape(B, H2 * W2 * C2)
        w3_mat = jnp.transpose(w3, (2, 3, 1, 0)).reshape(k3 * k3 * C2, C3)
        # Pad the 64-wide conv3 intermediate to a full 128-lane vreg so both
        # chained matmuls stay full MXU width (zero cols/rows -> exact).
        pad3 = _round_up(C3, LANE) - C3
        w3_mat = jnp.pad(w3_mat, ((0, 0), (0, pad3)))
        b3_p = jnp.pad(b3, (0, pad3))
        wf_p = jnp.pad(wf, ((0, pad3), (0, 0)))           # fc rows are channel order
        out = pallas_mlp_chain(
            flat, [(w3_mat, b3_p), (wf_p, bf), (w_head, b_head)],
            ["relu", "relu", "head"], n_actions=n_actions, out_dtype=jnp.float32)
    else:
        # General spatial size: conv3 as an im2col GEMM, then fused fc + heads.
        h = conv2d_relu(h, w3, b3, stride=1)              # [B, Ho3, Wo3, 64] NHWC
        flat = h.reshape(B, -1)                           # (h, w, c) feature order
        # Re-order fc rows from PyTorch's NCHW flatten (c, h, w) to (h, w, c).
        wf_r = wf.reshape(C3, Ho3, Wo3, -1).transpose(1, 2, 0, 3)
        wf_r = wf_r.reshape(Ho3 * Wo3 * C3, -1)
        out = pallas_mlp_chain(
            flat, [(wf_r, bf), (w_head, b_head)], ["relu", "head"],
            n_actions=n_actions, out_dtype=jnp.float32)

    policy = out[:, :n_actions]
    value = out[:, n_actions:n_actions + 1]
    return policy, value


# ---------------------------------------------------------------------------
# Deterministic parameter init (PyTorch-style uniform fan-in bounds)
# ---------------------------------------------------------------------------
def init_params(key, in_channels, n_actions, fc_in):
    ks = jax.random.split(key, 12)

    def uinit(kw, kb, w_shape, b_shape, fan_in):
        bound = 1.0 / jnp.sqrt(jnp.float32(fan_in))
        w = jax.random.uniform(kw, w_shape, jnp.float32, -bound, bound)
        b = jax.random.uniform(kb, b_shape, jnp.float32, -bound, bound)
        return w, b

    return {
        "conv1": uinit(ks[0], ks[1], (32, in_channels, 8, 8), (32,), in_channels * 8 * 8),
        "conv2": uinit(ks[2], ks[3], (64, 32, 4, 4), (64,), 32 * 4 * 4),
        "conv3": uinit(ks[4], ks[5], (64, 64, 3, 3), (64,), 64 * 3 * 3),
        "fc":    uinit(ks[6], ks[7], (fc_in, 512), (512,), fc_in),
        "actor": uinit(ks[8], ks[9], (512, n_actions), (n_actions,), 512),
        "critic": uinit(ks[10], ks[11], (512, 1), (1,), 512),
    }


# ---------------------------------------------------------------------------
# Pure-JAX f32 reference (PyTorch NCHW semantics) for verification
# ---------------------------------------------------------------------------
def _ref_forward(params, x):
    def conv(h, w, b, s):
        y = jax.lax.conv_general_dilated(
            h, w, (s, s), "VALID", dimension_numbers=("NCHW", "OIHW", "NCHW"))
        return jax.nn.relu(y + b[None, :, None, None])

    h = conv(x, *params["conv1"], 4)
    h = conv(h, *params["conv2"], 2)
    h = conv(h, *params["conv3"], 1)
    h = h.reshape(h.shape[0], -1)
    fc = jax.nn.relu(h @ params["fc"][0] + params["fc"][1])
    policy = jax.nn.softmax(fc @ params["actor"][0] + params["actor"][1], axis=-1)
    value = fc @ params["critic"][0] + params["critic"][1]
    return policy, value


if __name__ == "__main__":
    # Smallest spatial size compatible with the conv stack (k8s4 -> k4s2 -> k3s1) is 36.
    B, C, H, W = 2, 4, 36, 36
    n_actions = 6
    fc_in = 64 * 1 * 1          # 36 -> 8 -> 3 -> 1 spatial, 64 channels

    key = jax.random.PRNGKey(0)
    k_params, k_x = jax.random.split(key)
    params = init_params(k_params, C, n_actions, fc_in)
    x = jax.random.normal(k_x, (B, C, H, W), jnp.float32)

    fwd = jax.jit(functools.partial(actor_critic_forward, n_actions=n_actions))
    policy, value = fwd(params, x)
    policy = jax.block_until_ready(policy)
    value = jax.block_until_ready(value)

    assert policy.shape == (B, n_actions) and value.shape == (B, 1)

    ref_policy, ref_value = _ref_forward(params, x)
    # bf16 MXU inputs (f32 accumulation/epilogue): compare vs f32 ref loosely.
    assert jnp.allclose(policy, ref_policy, atol=2e-2, rtol=5e-2)
    assert jnp.allclose(value, ref_value, atol=2e-2, rtol=5e-2)
    # Exact in-kernel normalization: rows sum to 1 within f32 rounding.
    assert jnp.allclose(jnp.sum(policy, axis=-1), 1.0, atol=1e-3)

    print("KERNEL_OK")
</pallas_src>

<mosaic_0001>
module attributes {stable_mosaic.version = 11 : i64} {
  func.func @_mlp_chain_kernel(%arg0: i32, %arg1: memref<64x256xbf16, #tpu.memory_space<vmem>>, %arg2: memref<256x32xbf16, #tpu.memory_space<vmem>>, %arg3: memref<1x32xf32, #tpu.memory_space<vmem>>, %arg4: memref<64x32xbf16, #tpu.memory_space<vmem>>) attributes {dimension_semantics = [#tpu.dimension_semantics<parallel>], iteration_bounds = array<i64: 2>, scalar_prefetch = 0 : i64, scratch_operands = 0 : i64, tpu.core_type = #tpu.core_type<tc>, window_params = [{transform_indices = @transform_0, window_bounds = array<i64: 64, 256>}, {pipeline_mode = #tpu.pipeline_mode<synchronous>, transform_indices = @transform_1, window_bounds = array<i64: 256, 32>}, {pipeline_mode = #tpu.pipeline_mode<synchronous>, transform_indices = @transform_2, window_bounds = array<i64: 1, 32>}, {transform_indices = @transform_3, window_bounds = array<i64: 64, 32>}]} {
    %c0 = arith.constant 0 : index
    %c0_0 = arith.constant 0 : index
    %0 = vector.load %arg1[%c0, %c0_0] : memref<64x256xbf16, #tpu.memory_space<vmem>>, vector<64x256xbf16>
    %c0_1 = arith.constant 0 : index
    %c0_2 = arith.constant 0 : index
    %1 = vector.load %arg2[%c0_1, %c0_2] : memref<256x32xbf16, #tpu.memory_space<vmem>>, vector<256x32xbf16>
    %c0_3 = arith.constant 0 : index
    %c0_4 = arith.constant 0 : index
    %2 = vector.load %arg3[%c0_3, %c0_4] : memref<1x32xf32, #tpu.memory_space<vmem>>, vector<1x32xf32>
    %cst = arith.constant dense<0.000000e+00> : vector<64x32xf32>
    %3 = tpu.matmul %0, %1, %cst {dimension_numbers = #tpu.dot_dimension_numbers<[1], [0], [0], [1], [0, 0, 1, 1], [], []>} : vector<64x256xbf16>, vector<256x32xbf16>, vector<64x32xf32> -> vector<64x32xf32>
    %4 = vector.broadcast %2 : vector<1x32xf32> to vector<64x32xf32>
    %5 = arith.addf %3, %4 : vector<64x32xf32>
    %cst_5 = arith.constant 0.000000e+00 : f32
    %6 = vector.broadcast %cst_5 : f32 to vector<64x32xf32>
    %7 = arith.maximumf %5, %6 : vector<64x32xf32>
    %8 = arith.truncf %7 : vector<64x32xf32> to vector<64x32xbf16>
    %c0_6 = arith.constant 0 : index
    %c0_7 = arith.constant 0 : index
    %9 = vector.load %arg4[%c0_6, %c0_7] : memref<64x32xbf16, #tpu.memory_space<vmem>>, vector<64x32xbf16>
    tpu.vector_store %arg4[%c0_6, %c0_7], %8 {strides = array<i32>} : memref<64x32xbf16, #tpu.memory_space<vmem>>, vector<64x32xbf16>,
    return
  }
  func.func @transform_0(%arg0: i32) -> (i32, i32) {
    %c0_i32 = arith.constant 0 : i32
    %c0_i32_0 = arith.constant 0 : i32
    return %arg0, %c0_i32 : i32, i32
  }
  func.func @transform_1(%arg0: i32) -> (i32, i32) {
    %c0_i32 = arith.constant 0 : i32
    %c0_i32_0 = arith.constant 0 : i32
    %c0_i32_1 = arith.constant 0 : i32
    return %c0_i32, %c0_i32_0 : i32, i32
  }
  func.func @transform_2(%arg0: i32) -> (i32, i32) {
    %c0_i32 = arith.constant 0 : i32
    %c0_i32_0 = arith.constant 0 : i32
    %c0_i32_1 = arith.constant 0 : i32
    return %c0_i32, %c0_i32_0 : i32, i32
  }
  func.func @transform_3(%arg0: i32) -> (i32, i32) {
    %c0_i32 = arith.constant 0 : i32
    %c0_i32_0 = arith.constant 0 : i32
    return %arg0, %c0_i32 : i32, i32
  }
}

module attributes {stable_mosaic.version = 11 : i64} {
  func.func @_mlp_chain_kernel(%arg0: i32, %arg1: memref<24x512xbf16, #tpu.memory_space<vmem>>, %arg2: memref<512x64xbf16, #tpu.memory_space<vmem>>, %arg3: memref<1x64xf32, #tpu.memory_space<vmem>>, %arg4: memref<24x64xbf16, #tpu.memory_space<vmem>>) attributes {dimension_semantics = [#tpu.dimension_semantics<parallel>], iteration_bounds = array<i64: 1>, scalar_prefetch = 0 : i64, scratch_operands = 0 : i64, tpu.core_type = #tpu.core_type<tc>, window_params = [{transform_indices = @transform_0, window_bounds = array<i64: 24, 512>}, {pipeline_mode = #tpu.pipeline_mode<synchronous>, transform_indices = @transform_1, window_bounds = array<i64: 512, 64>}, {pipeline_mode = #tpu.pipeline_mode<synchronous>, transform_indices = @transform_2, window_bounds = array<i64: 1, 64>}, {transform_indices = @transform_3, window_bounds = array<i64: 24, 64>}]} {
    %c0 = arith.constant 0 : index
    %c0_0 = arith.constant 0 : index
    %0 = vector.load %arg1[%c0, %c0_0] : memref<24x512xbf16, #tpu.memory_space<vmem>>, vector<24x512xbf16>
    %c0_1 = arith.constant 0 : index
    %c0_2 = arith.constant 0 : index
    %1 = vector.load %arg2[%c0_1, %c0_2] : memref<512x64xbf16, #tpu.memory_space<vmem>>, vector<512x64xbf16>
    %c0_3 = arith.constant 0 : index
    %c0_4 = arith.constant 0 : index
    %2 = vector.load %arg3[%c0_3, %c0_4] : memref<1x64xf32, #tpu.memory_space<vmem>>, vector<1x64xf32>
    %cst = arith.constant dense<0.000000e+00> : vector<24x64xf32>
    %3 = tpu.matmul %0, %1, %cst {dimension_numbers = #tpu.dot_dimension_numbers<[1], [0], [0], [1], [0, 0, 1, 1], [], []>} : vector<24x512xbf16>, vector<512x64xbf16>, vector<24x64xf32> -> vector<24x64xf32>
    %4 = vector.broadcast %2 : vector<1x64xf32> to vector<24x64xf32>
    %5 = arith.addf %3, %4 : vector<24x64xf32>
    %cst_5 = arith.constant 0.000000e+00 : f32
    %6 = vector.broadcast %cst_5 : f32 to vector<24x64xf32>
    %7 = arith.maximumf %5, %6 : vector<24x64xf32>
    %8 = arith.truncf %7 : vector<24x64xf32> to vector<24x64xbf16>
    %c0_6 = arith.constant 0 : index
    %c0_7 = arith.constant 0 : index
    %9 = vector.load %arg4[%c0_6, %c0_7] : memref<24x64xbf16, #tpu.memory_space<vmem>>, vector<24x64xbf16>
    tpu.vector_store %arg4[%c0_6, %c0_7], %8 {strides = array<i32>} : memref<24x64xbf16, #tpu.memory_space<vmem>>, vector<24x64xbf16>,
    return
  }
  func.func @transform_0(%arg0: i32) -> (i32, i32) {
    %c0_i32 = arith.constant 0 : i32
    %c0_i32_0 = arith.constant 0 : i32
    return %arg0, %c0_i32 : i32, i32
  }
  func.func @transform_1(%arg0: i32) -> (i32, i32) {
    %c0_i32 = arith.constant 0 : i32
    %c0_i32_0 = arith.constant 0 : i32
    %c0_i32_1 = arith.constant 0 : i32
    return %c0_i32, %c0_i32_0 : i32, i32
  }
  func.func @transform_2(%arg0: i32) -> (i32, i32) {
    %c0_i32 = arith.constant 0 : i32
    %c0_i32_0 = arith.constant 0 : i32
    %c0_i32_1 = arith.constant 0 : i32
    return %c0_i32, %c0_i32_0 : i32, i32
  }
  func.func @transform_3(%arg0: i32) -> (i32, i32) {
    %c0_i32 = arith.constant 0 : i32
    %c0_i32_0 = arith.constant 0 : i32
    return %arg0, %c0_i32 : i32, i32
  }
}

module attributes {stable_mosaic.version = 11 : i64} {
  func.func @_mlp_chain_kernel(%arg0: i32, %arg1: memref<8x576xbf16, #tpu.memory_space<vmem>>, %arg2: memref<576x128xbf16, #tpu.memory_space<vmem>>, %arg3: memref<1x128xf32, #tpu.memory_space<vmem>>, %arg4: memref<128x512xbf16, #tpu.memory_space<vmem>>, %arg5: memref<1x512xf32, #tpu.memory_space<vmem>>, %arg6: memref<512x128xbf16, #tpu.memory_space<vmem>>, %arg7: memref<1x128xf32, #tpu.memory_space<vmem>>, %arg8: memref<8x128xf32, #tpu.memory_space<vmem>>) attributes {dimension_semantics = [#tpu.dimension_semantics<parallel>], iteration_bounds = array<i64: 1>, scalar_prefetch = 0 : i64, scratch_operands = 0 : i64, tpu.core_type = #tpu.core_type<tc>, window_params = [{transform_indices = @transform_0, window_bounds = array<i64: 8, 576>}, {pipeline_mode = #tpu.pipeline_mode<synchronous>, transform_indices = @transform_1, window_bounds = array<i64: 576, 128>}, {pipeline_mode = #tpu.pipeline_mode<synchronous>, transform_indices = @transform_2, window_bounds = array<i64: 1, 128>}, {pipeline_mode = #tpu.pipeline_mode<synchronous>, transform_indices = @transform_3, window_bounds = array<i64: 128, 512>}, {pipeline_mode = #tpu.pipeline_mode<synchronous>, transform_indices = @transform_4, window_bounds = array<i64: 1, 512>}, {pipeline_mode = #tpu.pipeline_mode<synchronous>, transform_indices = @transform_5, window_bounds = array<i64: 512, 128>}, {pipeline_mode = #tpu.pipeline_mode<synchronous>, transform_indices = @transform_6, window_bounds = array<i64: 1, 128>}, {transform_indices = @transform_7, window_bounds = array<i64: 8, 128>}]} {
    %c0 = arith.constant 0 : index
    %c0_0 = arith.constant 0 : index
    %0 = vector.load %arg1[%c0, %c0_0] : memref<8x576xbf16, #tpu.memory_space<vmem>>, vector<8x576xbf16>
    %c0_1 = arith.constant 0 : index
    %c0_2 = arith.constant 0 : index
    %1 = vector.load %arg2[%c0_1, %c0_2] : memref<576x128xbf16, #tpu.memory_space<vmem>>, vector<576x128xbf16>
    %c0_3 = arith.constant 0 : index
    %c0_4 = arith.constant 0 : index
    %2 = vector.load %arg3[%c0_3, %c0_4] : memref<1x128xf32, #tpu.memory_space<vmem>>, vector<1x128xf32>
    %cst = arith.constant dense<0.000000e+00> : vector<8x128xf32>
    %3 = tpu.matmul %0, %1, %cst {dimension_numbers = #tpu.dot_dimension_numbers<[1], [0], [0], [1], [0, 0, 1, 1], [], []>} : vector<8x576xbf16>, vector<576x128xbf16>, vector<8x128xf32> -> vector<8x128xf32>
    %4 = vector.broadcast %2 : vector<1x128xf32> to vector<8x128xf32>
    %5 = arith.addf %3, %4 : vector<8x128xf32>
    %cst_5 = arith.constant 0.000000e+00 : f32
    %6 = vector.broadcast %cst_5 : f32 to vector<8x128xf32>
    %7 = arith.maximumf %5, %6 : vector<8x128xf32>
    %8 = arith.truncf %7 : vector<8x128xf32> to vector<8x128xbf16>
    %c0_6 = arith.constant 0 : index
    %c0_7 = arith.constant 0 : index
    %9 = vector.load %arg4[%c0_6, %c0_7] : memref<128x512xbf16, #tpu.memory_space<vmem>>, vector<128x512xbf16>
    %c0_8 = arith.constant 0 : index
    %c0_9 = arith.constant 0 : index
    %10 = vector.load %arg5[%c0_8, %c0_9] : memref<1x512xf32, #tpu.memory_space<vmem>>, vector<1x512xf32>
    %cst_10 = arith.constant dense<0.000000e+00> : vector<8x512xf32>
    %11 = tpu.matmul %8, %9, %cst_10 {dimension_numbers = #tpu.dot_dimension_numbers<[1], [0], [0], [1], [0, 0, 1, 1], [], []>} : vector<8x128xbf16>, vector<128x512xbf16>, vector<8x512xf32> -> vector<8x512xf32>
    %12 = vector.broadcast %10 : vector<1x512xf32> to vector<8x512xf32>
    %13 = arith.addf %11, %12 : vector<8x512xf32>
    %cst_11 = arith.constant 0.000000e+00 : f32
    %14 = vector.broadcast %cst_11 : f32 to vector<8x512xf32>
    %15 = arith.maximumf %13, %14 : vector<8x512xf32>
    %16 = arith.truncf %15 : vector<8x512xf32> to vector<8x512xbf16>
    %c0_12 = arith.constant 0 : index
    %c0_13 = arith.constant 0 : index
    %17 = vector.load %arg6[%c0_12, %c0_13] : memref<512x128xbf16, #tpu.memory_space<vmem>>, vector<512x128xbf16>
    %c0_14 = arith.constant 0 : index
    %c0_15 = arith.constant 0 : index
    %18 = vector.load %arg7[%c0_14, %c0_15] : memref<1x128xf32, #tpu.memory_space<vmem>>, vector<1x128xf32>
    %cst_16 = arith.constant dense<0.000000e+00> : vector<8x128xf32>
    %19 = tpu.matmul %16, %17, %cst_16 {dimension_numbers = #tpu.dot_dimension_numbers<[1], [0], [0], [1], [0, 0, 1, 1], [], []>} : vector<8x512xbf16>, vector<512x128xbf16>, vector<8x128xf32> -> vector<8x128xf32>
    %20 = vector.broadcast %18 : vector<1x128xf32> to vector<8x128xf32>
    %21 = arith.addf %19, %20 : vector<8x128xf32>
    %22 = tpu.iota {dimensions = array<i32: 1>} : vector<8x128xi32>
    %c6_i32 = arith.constant 6 : i32
    %23 = vector.broadcast %c6_i32 : i32 to vector<8x128xi32>
    %24 = arith.cmpi slt, %22, %23 : vector<8x128xi32>
    %cst_17 = arith.constant 0xFF800000 : f32
    %25 = vector.broadcast %cst_17 : f32 to vector<8x128xf32>
    %26 = arith.select %24, %21, %25 : vector<8x128xi1>, vector<8x128xf32>
    %cst_18 = arith.constant dense<0xFF800000> : vector<8xf32>
    %27 = vector.multi_reduction <maximumf>, %26, %cst_18 [1] : vector<8x128xf32> to vector<8xf32>
    %28 = vector.shape_cast %27 : vector<8xf32> to vector<8x1xf32>
    %29 = vector.broadcast %28 : vector<8x1xf32> to vector<8x128xf32>
    %30 = arith.subf %26, %29 : vector<8x128xf32>
    %31 = math.exp %30 : vector<8x128xf32>
    %cst_19 = arith.constant dense<0.000000e+00> : vector<8xf32>
    %32 = vector.multi_reduction <add>, %31, %cst_19 [1] : vector<8x128xf32> to vector<8xf32>
    %33 = vector.shape_cast %32 : vector<8xf32> to vector<8x1xf32>
    %34 = vector.broadcast %33 : vector<8x1xf32> to vector<8x128xf32>
    %35 = arith.divf %31, %34 : vector<8x128xf32>
    %36 = arith.select %24, %35, %21 : vector<8x128xi1>, vector<8x128xf32>
    %c0_20 = arith.constant 0 : index
    %c0_21 = arith.constant 0 : index
    %37 = vector.load %arg8[%c0_20, %c0_21] : memref<8x128xf32, #tpu.memory_space<vmem>>, vector<8x128xf32>
    tpu.vector_store %arg8[%c0_20, %c0_21], %36 {strides = array<i32>} : memref<8x128xf32, #tpu.memory_space<vmem>>, vector<8x128xf32>,
    return
  }
  func.func @transform_0(%arg0: i32) -> (i32, i32) {
    %c0_i32 = arith.constant 0 : i32
    %c0_i32_0 = arith.constant 0 : i32
    return %arg0, %c0_i32 : i32, i32
  }
  func.func @transform_1(%arg0: i32) -> (i32, i32) {
    %c0_i32 = arith.constant 0 : i32
    %c0_i32_0 = arith.constant 0 : i32
    %c0_i32_1 = arith.constant 0 : i32
    return %c0_i32, %c0_i32_0 : i32, i32
  }
  func.func @transform_2(%arg0: i32) -> (i32, i32) {
    %c0_i32 = arith.constant 0 : i32
    %c0_i32_0 = arith.constant 0 : i32
    %c0_i32_1 = arith.constant 0 : i32
    return %c0_i32, %c0_i32_0 : i32, i32
  }
  func.func @transform_3(%arg0: i32) -> (i32, i32) {
    %c0_i32 = arith.constant 0 : i32
    %c0_i32_0 = arith.constant 0 : i32
    %c0_i32_1 = arith.constant 0 : i32
    return %c0_i32, %c0_i32_0 : i32, i32
  }
  func.func @transform_4(%arg0: i32) -> (i32, i32) {
    %c0_i32 = arith.constant 0 : i32
    %c0_i32_0 = arith.constant 0 : i32
    %c0_i32_1 = arith.constant 0 : i32
    return %c0_i32, %c0_i32_0 : i32, i32
  }
  func.func @transform_5(%arg0: i32) -> (i32, i32) {
    %c0_i32 = arith.constant 0 : i32
    %c0_i32_0 = arith.constant 0 : i32
    %c0_i32_1 = arith.constant 0 : i32
    return %c0_i32, %c0_i32_0 : i32, i32
  }
  func.func @transform_6(%arg0: i32) -> (i32, i32) {
    %c0_i32 = arith.constant 0 : i32
    %c0_i32_0 = arith.constant 0 : i32
    %c0_i32_1 = arith.constant 0 : i32
    return %c0_i32, %c0_i32_0 : i32, i32
  }
  func.func @transform_7(%arg0: i32) -> (i32, i32) {
    %c0_i32 = arith.constant 0 : i32
    %c0_i32_0 = arith.constant 0 : i32
    return %arg0, %c0_i32 : i32, i32
  }
}

</mosaic_0001>

<bundles_post_ra>
// kernel: actor_critic_forward.3
= control target key start
LH: loop header
LB: loop body
LE: loop exit
PB: predicated region body
PF: predicated region fallthrough
CT: control target
= control target key end

     0   :  { %s705_s12 = smov 0   ;;  %s805_s0 = inlined_call_operand.vmem [shape: bf16[128,256], index: 0, kind: input, shape index: {}]   ;;  %s806_s1 = inlined_call_operand.vmem [shape: bf16[256,32], index: 1, kind: input, shape index: {}]   ;;  %s807_s2 = inlined_call_operand.vmem [shape: f32[1,32], index: 2, kind: input, shape index: {}]   ;;  %s808_s3 = inlined_call_operand.vmem [shape: bf16[128,32], index: 3, kind: output, shape index: {}]  }
   0x1 LB: > { %s531_s13 = sadd.s32 4294967295, %s683_s12   ;;  %p535_p0 = scmp.ge.s32.totalorder %s683_s12, 1  ;;  %s683_s12 = sphi %s705_s12, %s13_s12  }
   0x2   : > { %p139_p1 = scmp.lt.s32.totalorder %s683_s12, 3 }
   0x4   : > { %p140_p2 = pnand %p535_p0, %p139_p1 }
   0x5   : > { %v649_v0 = vld [vmem:[%s806_s1 + $0x40] sm:$0xff] (!%p140_p2)   ;;  %s536_s16 = sshll.u32 (!%p140_p2), %s531_s13, 3  ;;  %v651_v2 = vld [vmem:[%s806_s1 + $0x48] sm:$0xff] (!%p140_p2)   ;;  %v653_v4 = vld [vmem:[%s806_s1 + $0x50] sm:$0xff] (!%p140_p2)   ;;  %vm466_vm0 = vcmask (!%p140_p2), 257024  }
   0x6   : > { %143 = sbr.rel (%p140_p2) target bundleno = 270 (0x10e), region = 32  ;;  %v650_v1 = vld [vmem:[%s806_s1] sm:$0xff] (!%p140_p2)   ;;  %585 = vmatprep.subr.bf16.mxu0 (!%p140_p2), %v649_v0  ;;  %625 = vmatprep.subr.bf16.mxu1 (!%p140_p2), %v649_v0  ;;  %v652_v3 = vld [vmem:[%s806_s1 + $0x8] sm:$0xff] (!%p140_p2)   ;;  %p165_p3 = scmp.lt.s32.totalorder (!%p140_p2), %s536_s16, 15  ;;  %v654_v5 = vld [vmem:[%s806_s1 + $0x10] sm:$0xff] (!%p140_p2)  }
   0x7   : > { %586 = vmatpush3.bf16.msra.mxu0 (!%p140_p2), %v650_v1  ;;  %633 = vmatpush3.bf16.msra.mxu1 (!%p140_p2), %v650_v1  ;;  %v655_v6 = vld [vmem:[%s806_s1 + $0x58] sm:$0xff] (!%p140_p2)   ;;  %v657_v8 = vld [vmem:[%s806_s1 + $0x60] sm:$0xff] (!%p140_p2)   ;;  %v659_v10 = vld [vmem:[%s806_s1 + $0x68] sm:$0xff] (!%p140_p2)  }
   0x8   : > { %587 = vmatprep.subr.bf16.mxu0 (!%p140_p2), %v651_v2  ;;  %626 = vmatprep.subr.bf16.mxu1 (!%p140_p2), %v651_v2  ;;  %v656_v7 = vld [vmem:[%s806_s1 + $0x18] sm:$0xff] (!%p140_p2)   ;;  %v658_v9 = vld [vmem:[%s806_s1 + $0x20] sm:$0xff] (!%p140_p2)   ;;  %v660_v13 = vld [vmem:[%s806_s1 + $0x28] sm:$0xff] (!%p140_p2)  }
   0x9   : > { %v661_v14 = vld [vmem:[%s806_s1 + $0x70] sm:$0xff] (!%p140_p2)   ;;  %v663_v16 = vld [vmem:[%s806_s1 + $0x78] sm:$0xff] (!%p140_p2)   ;;  %v541_v26 = vld [vmem:[%s807_s2] ss:$0 sm:$0xff] (!%p140_p2) }
   0xa   : > { %v662_v15 = vld [vmem:[%s806_s1 + $0x30] sm:$0xff] (!%p140_p2)   ;;  %v664_v17 = vld [vmem:[%s806_s1 + $0x38] sm:$0xff] (!%p140_p2)  }
   0xb   : > { %588 = vmatpush3.bf16.msra.mxu0 (!%p140_p2), %v652_v3  ;;  %634 = vmatpush3.bf16.msra.mxu1 (!%p140_p2), %v652_v3 }
   0xc   : > { %589 = vmatprep.subr.bf16.mxu0 (!%p140_p2), %v653_v4  ;;  %627 = vmatprep.subr.bf16.mxu1 (!%p140_p2), %v653_v4 }
   0xd   : > { %s810_s16 = smov (!%p165_p3, %s536_s16), 15 }
   0xe   : > { %s576_s4 = sshll.u32 %s810_s16, 3  ;;  %s540_s28 = sshll.u32 %s810_s16, 2 }
   0xf   : > { %590 = vmatpush3.bf16.msra.mxu0 %v654_v5  ;;  %635 = vmatpush3.bf16.msra.mxu1 %v654_v5  ;;  %s746_s9 = scalar_lea.vmem %s805_s0, %s576_s4  ;;  %s784_s4 = scalar_lea.vmem %s808_s3, %s540_s28 }
  0x10   : > { %591 = vmatprep.subr.bf16.mxu0 %v655_v6  ;;  %628 = vmatprep.subr.bf16.mxu1 %v655_v6  ;;  %v667_v11 = vld [vmem:[%s746_s9 + $0x4] ss:$8 sps:$4 sm:$0xff]   ;;  %v665_v18 = vld [vmem:[%s746_s9] ss:$8 sps:$4 sm:$0xff]   ;;  %v671_v20 = vld [vmem:[%s746_s9 + $0x14] ss:$8 sps:$4 sm:$0xff]  }
  0x11   : > { %v670_v12 = vld [vmem:[%s746_s9 + $0x24] ss:$8 sps:$4 sm:$0xff]   ;;  %393 = vmatprep.mubr.bf16.mxu0 %v667_v11  ;;  %v668_v19 = vld [vmem:[%s746_s9 + $0x20] ss:$8 sps:$4 sm:$0xff]   ;;  %v673_v21 = vld [vmem:[%s746_s9 + $0x34] ss:$8 sps:$4 sm:$0xff]  }
  0x12   : > { %409 = vmatprep.mubr.bf16.mxu1 %v670_v12  ;;  %v675_v22 = vld [vmem:[%s746_s9 + $0x10] ss:$8 sps:$4 sm:$0xff]  }
  0x13   : > { %592 = vmatpush3.bf16.msra.mxu0 %v656_v7  ;;  %636 = vmatpush3.bf16.msra.mxu1 %v656_v7  ;;  %v676_v23 = vld [vmem:[%s746_s9 + $0x30] ss:$8 sps:$4 sm:$0xff]  }
  0x14   : > { %593 = vmatprep.subr.bf16.mxu0 %v657_v8  ;;  %629 = vmatprep.subr.bf16.mxu1 %v657_v8 }
  0x17   : > { %594 = vmatpush3.bf16.msra.mxu0 %v658_v9  ;;  %637 = vmatpush3.bf16.msra.mxu1 %v658_v9 }
  0x18   : > { %595 = vmatprep.subr.bf16.mxu0 %v659_v10  ;;  %630 = vmatprep.subr.bf16.mxu1 %v659_v10 }
  0x1b   : > { %596 = vmatpush3.bf16.msra.mxu0 %v660_v13  ;;  %638 = vmatpush3.bf16.msra.mxu1 %v660_v13 }
  0x1c   : > { %597 = vmatprep.subr.bf16.mxu0 %v661_v14  ;;  %631 = vmatprep.subr.bf16.mxu1 %v661_v14 }
  0x1f   : > { %598 = vmatpush3.bf16.msra.mxu0 %v662_v15  ;;  %639 = vmatpush3.bf16.msra.mxu1 %v662_v15 }
  0x20   : > { %599 = vmatprep.subr.bf16.mxu0 %v663_v16  ;;  %632 = vmatprep.subr.bf16.mxu1 %v663_v16 }
  0x23   : > { %600 = vmatpush3.bf16.msra.mxu0 %v664_v17  ;;  %640 = vmatpush3.bf16.msra.mxu1 %v664_v17 }
  0x26   : > { %394 = vmatmul.mubr.bf16.vlgmr.msra.gmra.mrb[0].mxu0 %v665_v18  ;;  %410 = vmatmul.mubr.bf16.vlgmr.msra.gmra.mrb[0].mxu1 %v668_v19 }
  0x27   : > { %401 = vmatprep.mubr.bf16.mxu0 %v671_v20  ;;  %417 = vmatprep.mubr.bf16.mxu1 %v673_v21 }
  0x2e   : > { %402 = vmatmul.mubr.bf16.gmra.mrb[4].mxu0 %v675_v22  ;;  %418 = vmatmul.mubr.bf16.gmra.mrb[4].mxu1 %v676_v23 }
  0xf9   : > { %v601_v24 = vpop.f32.mrb[0].mxu0  ;;  %v613_v25 = vpop.f32.mrb[0].mxu1 }
  0xfa   : > { %v602_v27 = vpop.f32.mrb[1].mxu0  ;;  %v614_v28 = vpop.f32.mrb[1].mxu1 }
  0xfb   : > { %v603_v29 = vadd.f32 %v602_v27, %v601_v24  ;;  %v615_v30 = vadd.f32 %v614_v28, %v613_v25  ;;  %v604_v31 = vpop.f32.mrb[2].mxu0  ;;  %v616_v32 = vpop.f32.mrb[2].mxu1 }
  0xfc   : > { %v605_v33 = vpop.f32.mrb[3].mxu0  ;;  %v617_v34 = vpop.f32.mrb[3].mxu1 }
  0xfd   : > { %v396_v35 = vadd.f32 %v603_v29, %v541_v26  ;;  %v412_v36 = vadd.f32 %v615_v30, %v541_v26  ;;  %v606_v37 = vadd.f32 %v605_v33, %v604_v31  ;;  %v618_v38 = vadd.f32 %v617_v34, %v616_v32 }
  0xff   : > { %v426_v39 = vmax.f32 %v396_v35, 0.0  ;;  %v430_v40 = vmax.f32 %v412_v36, 0.0  ;;  %v399_v41 = vadd.f32 %v606_v37, %v541_v26  ;;  %v415_v42 = vadd.f32 %v618_v38, %v541_v26 }
 0x101   : > { %v577_v43 = vpack.c.bf16 %v426_v39, %v426_v39  ;;  %v581_v44 = vpack.c.bf16 %v430_v40, %v430_v40  ;;  %v427_v45 = vmax.f32 %v399_v41, 0.0  ;;  %v431_v46 = vmax.f32 %v415_v42, 0.0  ;;  %v607_v47 = vpop.f32.mrb[4].mxu0  ;;  %v619_v48 = vpop.f32.mrb[4].mxu1 }
 0x102   : > { %v608_v49 = vpop.f32.mrb[5].mxu0  ;;  %v620_v50 = vpop.f32.mrb[5].mxu1 }
 0x103   : > { %467 = vst.msk [vmem:[%s784_s4] sm:$0xf] %vm466_vm0, %v577_v43  ;;  %471 = vst.msk [vmem:[%s784_s4 + $0x10] sm:$0xf] %vm466_vm0, %v581_v44  ;;  %v578_v51 = vpack.c.bf16 %v427_v45, %v427_v45  ;;  %v582_v52 = vpack.c.bf16 %v431_v46, %v431_v46  ;;  %v609_v53 = vadd.f32 %v608_v49, %v607_v47  ;;  %v610_v55 = vpop.f32.mrb[6].mxu0  ;;  %v622_v56 = vpop.f32.mrb[6].mxu1 }
 0x104   : > { %v621_v54 = vadd.f32 %v620_v50, %v619_v48  ;;  %v611_v57 = vpop.f32.mrb[7].mxu0  ;;  %v623_v58 = vpop.f32.mrb[7].mxu1 }
 0x105   : > { %468 = vst.msk [vmem:[%s784_s4 + $0x4] sm:$0xf] %vm466_vm0, %v578_v51  ;;  %472 = vst.msk [vmem:[%s784_s4 + $0x14] sm:$0xf] %vm466_vm0, %v582_v52  ;;  %v404_v59 = vadd.f32 %v609_v53, %v541_v26  ;;  %v612_v61 = vadd.f32 %v611_v57, %v610_v55  ;;  %v624_v62 = vadd.f32 %v623_v58, %v622_v56 }
 0x106   : > { %v420_v60 = vadd.f32 %v621_v54, %v541_v26 }
 0x107   : > { %v428_v63 = vmax.f32 %v404_v59, 0.0  ;;  %v407_v1 = vadd.f32 %v612_v61, %v541_v26  ;;  %v423_v2 = vadd.f32 %v624_v62, %v541_v26 }
 0x108   : > { %v432_v0 = vmax.f32 %v420_v60, 0.0 }
 0x109   : > { %v579_v3 = vpack.c.bf16 %v428_v63, %v428_v63  ;;  %v429_v5 = vmax.f32 %v407_v1, 0.0  ;;  %v433_v6 = vmax.f32 %v423_v2, 0.0 }
 0x10a   : > { %v583_v4 = vpack.c.bf16 %v432_v0, %v432_v0 }
 0x10b   : > { %469 = vst.msk [vmem:[%s784_s4 + $0x8] sm:$0xf] %vm466_vm0, %v579_v3  ;;  %v580_v7 = vpack.c.bf16 %v429_v5, %v429_v5  ;;  %v584_v8 = vpack.c.bf16 %v433_v6, %v433_v6 }
 0x10c   : > { %473 = vst.msk [vmem:[%s784_s4 + $0x18] sm:$0xf] %vm466_vm0, %v583_v4 }
 0x10d   : > { %470 = vst.msk [vmem:[%s784_s4 + $0xc] sm:$0xf] %vm466_vm0, %v580_v7  ;;  %474 = vst.msk [vmem:[%s784_s4 + $0x1c] sm:$0xf] %vm466_vm0, %v584_v8 }
 0x10e PF: > { %s13_s12 = sadd.s32 1, %s683_s12  }
 0x10f   : > { %p10_p4 = scmp.ge.s32.totalorder %s13_s12, 4  }
 0x111   :  { %12 = sbr.rel (!%p10_p4) target bundleno = 1 (0x1), region = 62 }

// kernel: actor_critic_forward.4
= control target key start
LH: loop header
LB: loop body
LE: loop exit
PB: predicated region body
PF: predicated region fallthrough
CT: control target
= control target key end

     0   :  { %vm430_vm0 = vcmask 519168   ;;  %s732_s1 = inlined_call_operand.vmem [shape: bf16[512,64], index: 1, kind: input, shape index: {}]   ;;  %s733_s0 = inlined_call_operand.vmem [shape: bf16[24,512], index: 0, kind: input, shape index: {}]   ;;  %s734_s2 = inlined_call_operand.vmem [shape: f32[1,64], index: 2, kind: input, shape index: {}]   ;;  %s735_s3 = inlined_call_operand.vmem [shape: bf16[24,64], index: 3, kind: output, shape index: {}]  }
   0x1   :  { %v541_v0 = vld [vmem:[%s732_s1 + $0x40] sm:$0xff]   ;;  %v545_v4 = vld [vmem:[%s732_s1 + $0x48] sm:$0xff]   ;;  %v549_v8 = vld [vmem:[%s732_s1 + $0x50] sm:$0xff]  }
   0x2   :  { %v542_v1 = vld [vmem:[%s732_s1 + $0xc0] sm:$0xff]   ;;  %485 = vmatprep.subr.bf16.mxu0 %v541_v0  ;;  %v546_v5 = vld [vmem:[%s732_s1 + $0xc8] sm:$0xff]   ;;  %v550_v9 = vld [vmem:[%s732_s1 + $0xd0] sm:$0xff]  }
   0x3   :  { %v543_v2 = vld [vmem:[%s732_s1] sm:$0xff]   ;;  %513 = vmatprep.subr.bf16.mxu1 %v542_v1  ;;  %v547_v6 = vld [vmem:[%s732_s1 + $0x8] sm:$0xff]   ;;  %v551_v10 = vld [vmem:[%s732_s1 + $0x10] sm:$0xff]  }
   0x4   :  { %v544_v3 = vld [vmem:[%s732_s1 + $0x80] sm:$0xff]   ;;  %486 = vmatpush3.bf16.msra.mxu0 %v543_v2  ;;  %v548_v7 = vld [vmem:[%s732_s1 + $0x88] sm:$0xff]   ;;  %v552_v11 = vld [vmem:[%s732_s1 + $0x90] sm:$0xff]  }
   0x5   :  { %514 = vmatpush3.bf16.msra.mxu1 %v544_v3  ;;  %487 = vmatprep.subr.bf16.mxu0 %v545_v4  ;;  %v553_v12 = vld [vmem:[%s732_s1 + $0x58] sm:$0xff]   ;;  %v557_v16 = vld [vmem:[%s732_s1 + $0x60] sm:$0xff]   ;;  %v561_v20 = vld [vmem:[%s732_s1 + $0x68] sm:$0xff]  }
   0x6   :  { %515 = vmatprep.subr.bf16.mxu1 %v546_v5  ;;  %v554_v13 = vld [vmem:[%s732_s1 + $0xd8] sm:$0xff]   ;;  %v558_v17 = vld [vmem:[%s732_s1 + $0xe0] sm:$0xff]   ;;  %v562_v21 = vld [vmem:[%s732_s1 + $0xe8] sm:$0xff]  }
   0x7   :  { %v555_v14 = vld [vmem:[%s732_s1 + $0x18] sm:$0xff]   ;;  %v559_v18 = vld [vmem:[%s732_s1 + $0x20] sm:$0xff]   ;;  %v563_v22 = vld [vmem:[%s732_s1 + $0x28] sm:$0xff]  }
   0x8   :  { %488 = vmatpush3.bf16.msra.mxu0 %v547_v6  ;;  %v556_v15 = vld [vmem:[%s732_s1 + $0x98] sm:$0xff]   ;;  %v560_v19 = vld [vmem:[%s732_s1 + $0xa0] sm:$0xff]   ;;  %v564_v23 = vld [vmem:[%s732_s1 + $0xa8] sm:$0xff]  }
   0x9   :  { %516 = vmatpush3.bf16.msra.mxu1 %v548_v7  ;;  %489 = vmatprep.subr.bf16.mxu0 %v549_v8  ;;  %v565_v24 = vld [vmem:[%s732_s1 + $0x70] sm:$0xff]   ;;  %v569_v28 = vld [vmem:[%s732_s1 + $0x78] sm:$0xff]   ;;  %v19_v36 = vld [vmem:[%s733_s0 + $0x20] sm:$0xff] }
   0xa   :  { %517 = vmatprep.subr.bf16.mxu1 %v550_v9  ;;  %v566_v25 = vld [vmem:[%s732_s1 + $0xf0] sm:$0xff]   ;;  %v570_v29 = vld [vmem:[%s732_s1 + $0xf8] sm:$0xff]   ;;  %v444_v37 = vcombine.high %v19_v36, %v19_v36  ;;  %v20_v38 = vld [vmem:[%s733_s0 + $0x28] sm:$0xff]  ;;  %v443_v40 = vcombine.low %v19_v36, %v19_v36 }
   0xb   :  { %v567_v26 = vld [vmem:[%s732_s1 + $0x30] sm:$0xff]   ;;  %v571_v30 = vld [vmem:[%s732_s1 + $0x38] sm:$0xff]   ;;  %v446_v39 = vcombine.high %v20_v38, %v20_v38  ;;  %v445_v41 = vcombine.low %v20_v38, %v20_v38  ;;  %v438_v44 = vld [vmem:[%s734_s2] ss:$0 sm:$0xff] }
   0xc   :  { %490 = vmatpush3.bf16.msra.mxu0 %v551_v10  ;;  %v568_v27 = vld [vmem:[%s732_s1 + $0xb0] sm:$0xff]   ;;  %v572_v31 = vld [vmem:[%s732_s1 + $0xb8] sm:$0xff]  }
   0xd   :  { %518 = vmatpush3.bf16.msra.mxu1 %v552_v11  ;;  %491 = vmatprep.subr.bf16.mxu0 %v553_v12  ;;  %v573_v32 = vld [vmem:[%s733_s0] ss:$16 sps:$4 sm:$0xff]   ;;  %v575_v33 = vld [vmem:[%s733_s0 + $0x4] ss:$16 sps:$4 sm:$0xff]   ;;  %v576_v34 = vld [vmem:[%s733_s0 + $0x8] ss:$16 sps:$4 sm:$0xff]  }
   0xe   :  { %519 = vmatprep.subr.bf16.mxu1 %v554_v13  ;;  %v578_v35 = vld [vmem:[%s733_s0 + $0xc] ss:$16 sps:$4 sm:$0xff]   ;;  %350 = vmatprep.mubr.bf16.mxu0 %v575_v33 }
   0xf   :  { %398 = vmatprep.mubr.bf16.mxu1 %v578_v35 }
  0x10   :  { %492 = vmatpush3.bf16.msra.mxu0 %v555_v14 }
  0x11   :  { %520 = vmatpush3.bf16.msra.mxu1 %v556_v15  ;;  %493 = vmatprep.subr.bf16.mxu0 %v557_v16 }
  0x12   :  { %521 = vmatprep.subr.bf16.mxu1 %v558_v17 }
  0x14   :  { %494 = vmatpush3.bf16.msra.mxu0 %v559_v18 }
  0x15   :  { %522 = vmatpush3.bf16.msra.mxu1 %v560_v19  ;;  %495 = vmatprep.subr.bf16.mxu0 %v561_v20 }
  0x16   :  { %523 = vmatprep.subr.bf16.mxu1 %v562_v21 }
  0x18   :  { %496 = vmatpush3.bf16.msra.mxu0 %v563_v22 }
  0x19   :  { %524 = vmatpush3.bf16.msra.mxu1 %v564_v23  ;;  %497 = vmatprep.subr.bf16.mxu0 %v565_v24 }
  0x1a   :  { %525 = vmatprep.subr.bf16.mxu1 %v566_v25 }
  0x1c   :  { %498 = vmatpush3.bf16.msra.mxu0 %v567_v26 }
  0x1d   :  { %526 = vmatpush3.bf16.msra.mxu1 %v568_v27  ;;  %499 = vmatprep.subr.bf16.mxu0 %v569_v28 }
  0x1e   :  { %527 = vmatprep.subr.bf16.mxu1 %v570_v29 }
  0x20   :  { %500 = vmatpush3.bf16.msra.mxu0 %v571_v30 }
  0x21   :  { %528 = vmatpush3.bf16.msra.mxu1 %v572_v31 }
  0x23   :  { %351 = vmatmul.mubr.bf16.vlgmr.msra.gmra.mrb[0].mxu0 %v573_v32 }
  0x24   :  { %399 = vmatmul.mubr.bf16.vlgmr.msra.gmra.mrb[0].mxu1 %v576_v34  ;;  %358 = vmatprep.mubr.bf16.mxu0 %v444_v37 }
  0x25   :  { %406 = vmatprep.mubr.bf16.mxu1 %v446_v39 }
  0x2b   :  { %359 = vmatmul.mubr.bf16.gmra.mrb[4].mxu0 %v443_v40 }
  0x2c   :  { %407 = vmatmul.mubr.bf16.gmra.mrb[4].mxu1 %v445_v41 }
  0xf6   :  { %v501_v42 = vpop.f32.mrb[0].mxu0 }
  0xf7   :  { %v529_v43 = vpop.f32.mrb[0].mxu1  ;;  %v502_v45 = vpop.f32.mrb[1].mxu0 }
  0xf8   :  { %v503_v46 = vadd.f32 %v502_v45, %v501_v42  ;;  %v530_v47 = vpop.f32.mrb[1].mxu1  ;;  %v504_v48 = vpop.f32.mrb[2].mxu0 }
  0xf9   :  { %v531_v49 = vadd.f32 %v530_v47, %v529_v43  ;;  %v532_v50 = vpop.f32.mrb[2].mxu1  ;;  %v505_v51 = vpop.f32.mrb[3].mxu0 }
  0xfa   :  { %v353_v52 = vadd.f32 %v503_v46, %v438_v44  ;;  %v506_v53 = vadd.f32 %v505_v51, %v504_v48  ;;  %v533_v54 = vpop.f32.mrb[3].mxu1 }
  0xfb   :  { %v534_v55 = vadd.f32 %v533_v54, %v532_v50 }
  0xfc   :  { %v401_v56 = vadd.f32 %v531_v49, %v353_v52  ;;  %v356_v57 = vadd.f32 %v506_v53, %v438_v44 }
  0xfe   :  { %v414_v58 = vmax.f32 %v401_v56, 0.0  ;;  %v404_v59 = vadd.f32 %v534_v55, %v356_v57  ;;  %v507_v60 = vpop.f32.mrb[4].mxu0 }
  0xff   :  { %v535_v61 = vpop.f32.mrb[4].mxu1  ;;  %v508_v62 = vpop.f32.mrb[5].mxu0 }
 0x100   :  { %v482_v63 = vpack.c.bf16 %v414_v58, %v414_v58  ;;  %v415_v0 = vmax.f32 %v404_v59, 0.0  ;;  %v509_v1 = vadd.f32 %v508_v62, %v507_v60  ;;  %v536_v2 = vpop.f32.mrb[5].mxu1  ;;  %v510_v3 = vpop.f32.mrb[6].mxu0 }
 0x101   :  { %v537_v4 = vadd.f32 %v536_v2, %v535_v61  ;;  %v538_v5 = vpop.f32.mrb[6].mxu1  ;;  %v511_v6 = vpop.f32.mrb[7].mxu0 }
 0x102   :  { %431 = vst.msk [vmem:[%s735_s3] sm:$0xf] %vm430_vm0, %v482_v63  ;;  %v483_v7 = vpack.c.bf16 %v415_v0, %v415_v0  ;;  %v361_v8 = vadd.f32 %v509_v1, %v438_v44  ;;  %v539_v9 = vpop.f32.mrb[7].mxu1 }
 0x104   :  { %432 = vst.msk [vmem:[%s735_s3 + $0x4] sm:$0xf] %vm430_vm0, %v483_v7  ;;  %v409_v10 = vadd.f32 %v537_v4, %v361_v8 }
 0x106   :  { %v416_v11 = vmax.f32 %v409_v10, 0.0 }
 0x108   :  { %v484_v12 = vpack.c.bf16 %v416_v11, %v416_v11 }
 0x10a   :  { %433 = vst.msk [vmem:[%s735_s3 + $0x8] sm:$0xf] %vm430_vm0, %v484_v12 }

// kernel: actor_critic_forward.5
= control target key start
LH: loop header
LB: loop body
LE: loop exit
PB: predicated region body
PF: predicated region fallthrough
CT: control target
= control target key end

     0   :  { %v1475_v35 = vmov 0.0   ;;  %vm1476_vm0 = vmmov 0   ;;  %vm342_vm1 = vcmask 523264   ;;  %s1839_s1 = inlined_call_operand.vmem [shape: bf16[576,128], index: 1, kind: input, shape index: {}]   ;;  %s1840_s0 = inlined_call_operand.vmem [shape: bf16[8,576], index: 0, kind: input, shape index: {}]   ;;  %s1841_s3 = inlined_call_operand.vmem [shape: bf16[128,512], index: 3, kind: input, shape index: {}]   ;;  %s1842_s5 = inlined_call_operand.vmem [shape: bf16[512,128], index: 5, kind: input, shape index: {}]   ;;  %s1843_s2 = inlined_call_operand.vmem [shape: f32[1,128], index: 2, kind: input, shape index: {}]   ;;  %s1844_s4 = inlined_call_operand.vmem [shape: f32[1,512], index: 4, kind: input, shape index: {}]   ;;  %s1845_s6 = inlined_call_operand.vmem [shape: f32[1,128], index: 6, kind: input, shape index: {}]   ;;  %s1846_s7 = inlined_call_operand.vmem [shape: f32[8,128], index: 7, kind: output, shape index: {}]  }
   0x1   :  { %v1350_v0 = vld [vmem:[%s1839_s1 + $0x40] sm:$0xff]   ;;  %v1354_v4 = vld [vmem:[%s1839_s1 + $0x48] sm:$0xff]   ;;  %v1358_v8 = vld [vmem:[%s1839_s1 + $0x50] sm:$0xff]  }
   0x2   :  { %v1351_v1 = vld [vmem:[%s1839_s1] sm:$0xff]   ;;  %1242 = vmatprep.subr.bf16.mxu0 %v1350_v0  ;;  %v1355_v5 = vld [vmem:[%s1839_s1 + $0x8] sm:$0xff]   ;;  %v1359_v9 = vld [vmem:[%s1839_s1 + $0x10] sm:$0xff]  }
   0x3   :  { %v1352_v2 = vld [vmem:[%s1839_s1 + $0xc0] sm:$0xff]   ;;  %1243 = vmatpush3.bf16.msra.mxu0 %v1351_v1  ;;  %v1356_v6 = vld [vmem:[%s1839_s1 + $0xc8] sm:$0xff]   ;;  %v1360_v10 = vld [vmem:[%s1839_s1 + $0xd0] sm:$0xff]  }
   0x4   :  { %v1353_v3 = vld [vmem:[%s1839_s1 + $0x80] sm:$0xff]   ;;  %1264 = vmatprep.subr.bf16.mxu1 %v1352_v2  ;;  %1244 = vmatprep.subr.bf16.mxu0 %v1354_v4  ;;  %v1357_v7 = vld [vmem:[%s1839_s1 + $0x88] sm:$0xff]   ;;  %v1361_v11 = vld [vmem:[%s1839_s1 + $0x90] sm:$0xff]  }
   0x5   :  { %1265 = vmatpush3.bf16.msra.mxu1 %v1353_v3  ;;  %v1362_v12 = vld [vmem:[%s1839_s1 + $0x58] sm:$0xff]   ;;  %v1366_v16 = vld [vmem:[%s1839_s1 + $0x60] sm:$0xff]   ;;  %v1370_v20 = vld [vmem:[%s1839_s1 + $0x68] sm:$0xff]  }
   0x6   :  { %1266 = vmatprep.subr.bf16.mxu1 %v1356_v6  ;;  %v1363_v13 = vld [vmem:[%s1839_s1 + $0x18] sm:$0xff]   ;;  %v1367_v17 = vld [vmem:[%s1839_s1 + $0x20] sm:$0xff]   ;;  %v1371_v21 = vld [vmem:[%s1839_s1 + $0x28] sm:$0xff]  }
   0x7   :  { %1245 = vmatpush3.bf16.msra.mxu0 %v1355_v5  ;;  %v1364_v14 = vld [vmem:[%s1839_s1 + $0xd8] sm:$0xff]   ;;  %v1368_v18 = vld [vmem:[%s1839_s1 + $0xe0] sm:$0xff]   ;;  %v1372_v22 = vld [vmem:[%s1839_s1 + $0xe8] sm:$0xff]  }
   0x8   :  { %1246 = vmatprep.subr.bf16.mxu0 %v1358_v8  ;;  %v1365_v15 = vld [vmem:[%s1839_s1 + $0x98] sm:$0xff]   ;;  %v1369_v19 = vld [vmem:[%s1839_s1 + $0xa0] sm:$0xff]   ;;  %v1373_v23 = vld [vmem:[%s1839_s1 + $0xa8] sm:$0xff]  }
   0x9   :  { %1267 = vmatpush3.bf16.msra.mxu1 %v1357_v7  ;;  %v1374_v24 = vld [vmem:[%s1839_s1 + $0x70] sm:$0xff]   ;;  %v1378_v28 = vld [vmem:[%s1839_s1 + $0x78] sm:$0xff]   ;;  %v27_v31 = vld [vmem:[%s1840_s0] sm:$0xff] }
   0xa   :  { %1268 = vmatprep.subr.bf16.mxu1 %v1360_v10  ;;  %v1375_v25 = vld [vmem:[%s1839_s1 + $0x30] sm:$0xff]   ;;  %v1379_v29 = vld [vmem:[%s1839_s1 + $0x38] sm:$0xff]   ;;  %v1135_v32 = vcombine.low %v27_v31, %v27_v31  ;;  %v1136_v33 = vcombine.high %v27_v31, %v27_v31  ;;  %v28_v36 = vld [vmem:[%s1840_s0 + $0x8] sm:$0xff] }
   0xb   :  { %1247 = vmatpush3.bf16.msra.mxu0 %v1359_v9  ;;  %v1376_v26 = vld [vmem:[%s1839_s1 + $0xf0] sm:$0xff]   ;;  %v1380_v30 = vld [vmem:[%s1839_s1 + $0xf8] sm:$0xff]   ;;  %v1137_v37 = vcombine.low %v28_v36, %v28_v36  ;;  %v1138_v38 = vcombine.high %v28_v36, %v28_v36  ;;  %v1387_v39 = vld [vmem:[%s1839_s1 + $0x100] sm:$0xff]  }
   0xc   :  { %1248 = vmatprep.subr.bf16.mxu0 %v1362_v12  ;;  %v1377_v27 = vld [vmem:[%s1839_s1 + $0xb0] sm:$0xff]   ;;  %v1384_v34 = vld [vmem:[%s1839_s1 + $0xb8] sm:$0xff]   ;;  %378 = vmatprep.mubr.bf16.mxu0 %v1136_v33  ;;  %v1388_v40 = vld [vmem:[%s1839_s1 + $0x108] sm:$0xff]   ;;  %v1477_v12 = vmov 0  }
   0xd   :  { %1269 = vmatpush3.bf16.msra.mxu1 %v1361_v11  ;;  %418 = vmatprep.mubr.bf16.mxu1 %v1138_v38  ;;  %v1391_v41 = vld [vmem:[%s1841_s3] ss:$16 sps:$4 sm:$0xff]   ;;  %v1393_v42 = vld [vmem:[%s1841_s3 + $0x4] ss:$16 sps:$4 sm:$0xff]   ;;  %v1390_v46 = vld [vmem:[%s1839_s1 + $0x118] sm:$0xff]  }
   0xe   :  { %1270 = vmatprep.subr.bf16.mxu1 %v1364_v14  ;;  %v1389_v43 = vld [vmem:[%s1839_s1 + $0x110] sm:$0xff]   ;;  %v1396_v48 = vld [vmem:[%s1841_s3 + $0xc] ss:$16 sps:$4 sm:$0xff]   ;;  %v1394_v51 = vld [vmem:[%s1841_s3 + $0x8] ss:$16 sps:$4 sm:$0xff]  }
   0xf   :  { %1249 = vmatpush3.bf16.msra.mxu0 %v1363_v13  ;;  %v1397_v44 = vld [vmem:[%s1841_s3 + $0x20] ss:$16 sps:$4 sm:$0xff]   ;;  %v1399_v45 = vld [vmem:[%s1841_s3 + $0x24] ss:$16 sps:$4 sm:$0xff]   ;;  %v1402_v52 = vld [vmem:[%s1841_s3 + $0x2c] ss:$16 sps:$4 sm:$0xff]  }
  0x10   :  { %1250 = vmatprep.subr.bf16.mxu0 %v1366_v16  ;;  %v1405_v47 = vld [vmem:[%s1841_s3 + $0x44] ss:$16 sps:$4 sm:$0xff]   ;;  %v1383_v49 = vld [vmem:[%s1840_s0 + $0x10] ss:$0 sps:$4 sm:$0xff]   ;;  %v1400_v53 = vld [vmem:[%s1841_s3 + $0x28] ss:$16 sps:$4 sm:$0xff]  }
  0x11   :  { %1271 = vmatpush3.bf16.msra.mxu1 %v1365_v15  ;;  %v1403_v50 = vld [vmem:[%s1841_s3 + $0x40] ss:$16 sps:$4 sm:$0xff]   ;;  %v1408_v54 = vld [vmem:[%s1841_s3 + $0x4c] ss:$16 sps:$4 sm:$0xff]   ;;  %v1406_v55 = vld [vmem:[%s1841_s3 + $0x48] ss:$16 sps:$4 sm:$0xff]  }
  0x12   :  { %1272 = vmatprep.subr.bf16.mxu1 %v1368_v18  ;;  %v1411_v56 = vld [vmem:[%s1841_s3 + $0x64] ss:$16 sps:$4 sm:$0xff]   ;;  %v1414_v57 = vld [vmem:[%s1841_s3 + $0x6c] ss:$16 sps:$4 sm:$0xff]   ;;  %v1409_v58 = vld [vmem:[%s1841_s3 + $0x60] ss:$16 sps:$4 sm:$0xff]  }
  0x13   :  { %1251 = vmatpush3.bf16.msra.mxu0 %v1367_v17  ;;  %v1412_v59 = vld [vmem:[%s1841_s3 + $0x68] ss:$16 sps:$4 sm:$0xff]   ;;  %v1415_v60 = vld [vmem:[%s1841_s3 + $0x80] ss:$16 sps:$4 sm:$0xff]   ;;  %v1417_v61 = vld [vmem:[%s1841_s3 + $0x84] ss:$16 sps:$4 sm:$0xff]  }
  0x14   :  { %1252 = vmatprep.subr.bf16.mxu0 %v1370_v20  ;;  %v1418_v62 = vld [vmem:[%s1841_s3 + $0x88] ss:$16 sps:$4 sm:$0xff]   ;;  %v1420_v63 = vld [vmem:[%s1841_s3 + $0x8c] ss:$16 sps:$4 sm:$0xff]   ;;  %v1423_v0 = vld [vmem:[%s1841_s3 + $0xa4] ss:$16 sps:$4 sm:$0xff]  }
  0x15   :  { %1273 = vmatpush3.bf16.msra.mxu1 %v1369_v19  ;;  %v1426_v1 = vld [vmem:[%s1841_s3 + $0xac] ss:$16 sps:$4 sm:$0xff]   ;;  %v1421_v2 = vld [vmem:[%s1841_s3 + $0xa0] ss:$16 sps:$4 sm:$0xff]   ;;  %v1424_v3 = vld [vmem:[%s1841_s3 + $0xa8] ss:$16 sps:$4 sm:$0xff]  }
  0x16   :  { %1274 = vmatprep.subr.bf16.mxu1 %v1372_v22  ;;  %v1429_v4 = vld [vmem:[%s1841_s3 + $0xc4] ss:$16 sps:$4 sm:$0xff]   ;;  %v1432_v5 = vld [vmem:[%s1841_s3 + $0xcc] ss:$16 sps:$4 sm:$0xff]   ;;  %v1427_v6 = vld [vmem:[%s1841_s3 + $0xc0] ss:$16 sps:$4 sm:$0xff]  }
  0x17   :  { %1253 = vmatpush3.bf16.msra.mxu0 %v1371_v21  ;;  %v1430_v7 = vld [vmem:[%s1841_s3 + $0xc8] ss:$16 sps:$4 sm:$0xff]   ;;  %v1435_v8 = vld [vmem:[%s1841_s3 + $0xe4] ss:$16 sps:$4 sm:$0xff]   ;;  %v1438_v9 = vld [vmem:[%s1841_s3 + $0xec] ss:$16 sps:$4 sm:$0xff]  }
  0x18   :  { %1254 = vmatprep.subr.bf16.mxu0 %v1374_v24  ;;  %v1433_v10 = vld [vmem:[%s1841_s3 + $0xe0] ss:$16 sps:$4 sm:$0xff]   ;;  %v1436_v11 = vld [vmem:[%s1841_s3 + $0xe8] ss:$16 sps:$4 sm:$0xff]  }
  0x19   :  { %1275 = vmatpush3.bf16.msra.mxu1 %v1373_v23  ;;  %v1439_v13 = vld [vmem:[%s1842_s5 + $0x40] sm:$0xff]   ;;  %v1444_v38 = vld [vmem:[%s1842_s5 + $0xc8] sm:$0xff]  }
  0x1a   :  { %1276 = vmatprep.subr.bf16.mxu1 %v1376_v26  ;;  %v1440_v14 = vld [vmem:[%s1842_s5 + $0xc0] sm:$0xff]  }
  0x1b   :  { %1255 = vmatpush3.bf16.msra.mxu0 %v1375_v25  ;;  %v1134_v16 = vld [vmem:[%s1843_s2] ss:$0 sm:$0xff] }
  0x1c   :  { %1256 = vmatprep.subr.bf16.mxu0 %v1378_v28 }
  0x1d   :  { %1277 = vmatpush3.bf16.msra.mxu1 %v1377_v27 }
  0x1e   :  { %1278 = vmatprep.subr.bf16.mxu1 %v1380_v30 }
  0x1f   :  { %1257 = vmatpush3.bf16.msra.mxu0 %v1379_v29 }
  0x20   :  { %1335 = vmatprep.subr.bf16.mxu0 %v1475_v35 }
  0x21   :  { %1279 = vmatpush3.bf16.msra.mxu1 %v1384_v34  ;;  %v1441_v34 = vld [vmem:[%s1842_s5] sm:$0xff]  }
  0x22   :  { %379 = vmatmul.mubr.bf16.vlgmr.msra.gmra.mrb[0].mxu0 %v1135_v32  ;;  %682 = vmatprep.subr.bf16.mxu1 %v1393_v42  ;;  %v1448_v42 = vld [vmem:[%s1842_s5 + $0xd0] sm:$0xff]  }
  0x23   :  { %1336 = vmatpush3.bf16.msra.mxu0 %v1387_v39  ;;  %1343 = vmatprep.mubr.msk.bf16.mxu0 %vm1476_vm0, %v1475_v35  ;;  %v1445_v39 = vld [vmem:[%s1842_s5 + $0x8] sm:$0xff]  }
  0x24   :  { %419 = vmatmul.mubr.bf16.vlgmr.msra.gmra.mrb[0].mxu1 %v1137_v37  ;;  %1337 = vmatprep.subr.bf16.mxu0 %v1475_v35  ;;  %v1443_v37 = vld [vmem:[%s1842_s5 + $0x48] sm:$0xff]  }
  0x25   :  { %683 = vmatpush1.bf16.msra.mxu1 %v1391_v41  ;;  %714 = vmatprep.mubr.bf16.mxu1 %v1477_v12  ;;  %v1447_v41 = vld [vmem:[%s1842_s5 + $0x50] sm:$0xff]  }
  0x26   :  { %684 = vmatprep.subr.bf16.mxu1 %v1399_v45  ;;  %v1451_v45 = vld [vmem:[%s1842_s5 + $0x58] sm:$0xff]  }
  0x27   :  { %1338 = vmatpush3.bf16.msra.mxu0 %v1388_v40  ;;  %v1446_v40 = vld [vmem:[%s1842_s5 + $0x88] sm:$0xff]  }
  0x28   :  { %1339 = vmatprep.subr.bf16.mxu0 %v1475_v35 }
  0x29   :  { %685 = vmatpush1.bf16.msra.mxu1 %v1397_v44  ;;  %v1450_v44 = vld [vmem:[%s1842_s5 + $0x90] sm:$0xff]  }
  0x2a   :  { %686 = vmatprep.subr.bf16.mxu1 %v1405_v47  ;;  %v1453_v47 = vld [vmem:[%s1842_s5 + $0x18] sm:$0xff]  }
  0x2b   :  { %1340 = vmatpush3.bf16.msra.mxu0 %v1389_v43  ;;  %v1449_v43 = vld [vmem:[%s1842_s5 + $0x10] sm:$0xff]  }
  0x2c   :  { %1341 = vmatprep.subr.bf16.mxu0 %v1475_v35  ;;  %v1442_v35 = vld [vmem:[%s1842_s5 + $0x80] sm:$0xff]  }
  0x2d   :  { %687 = vmatpush1.bf16.msra.mxu1 %v1403_v50  ;;  %v1456_v50 = vld [vmem:[%s1842_s5 + $0xe0] sm:$0xff]  }
  0x2e   :  { %688 = vmatprep.subr.bf16.mxu1 %v1411_v56  ;;  %v1462_v56 = vld [vmem:[%s1842_s5 + $0xa8] sm:$0xff]  }
  0x2f   :  { %1342 = vmatpush3.bf16.msra.mxu0 %v1390_v46  ;;  %v1452_v46 = vld [vmem:[%s1842_s5 + $0xd8] sm:$0xff]  }
  0x30   :  { %723 = vmatprep.subr.bf16.mxu0 %v1396_v48  ;;  %v1454_v48 = vld [vmem:[%s1842_s5 + $0x98] sm:$0xff]  }
  0x31   :  { %689 = vmatpush1.bf16.msra.mxu1 %v1409_v58  ;;  %v1464_v58 = vld [vmem:[%s1842_s5 + $0xf0] sm:$0xff]  }
  0x32   :  { %1344 = vmatmul.mubr.msk.bf16.vlgmr.msra.gmra.mrb[4].mxu0 %vm342_vm1, %v1383_v49  ;;  %690 = vmatprep.subr.bf16.mxu1 %v1417_v61  ;;  %v1455_v49 = vld [vmem:[%s1842_s5 + $0x60] sm:$0xff]   ;;  %v1467_v61 = vld [vmem:[%s1842_s5 + $0x78] sm:$0xff]  }
  0x33   :  { %724 = vmatpush1.bf16.msra.mxu0 %v1394_v51  ;;  %755 = vmatprep.mubr.bf16.mxu0 %v1477_v12  ;;  %v1457_v51 = vld [vmem:[%s1842_s5 + $0x20] sm:$0xff]  }
  0x34   :  { %725 = vmatprep.subr.bf16.mxu0 %v1402_v52  ;;  %v1458_v52 = vld [vmem:[%s1842_s5 + $0xa0] sm:$0xff]  }
  0x35   :  { %691 = vmatpush1.bf16.msra.mxu1 %v1415_v60  ;;  %v1466_v60 = vld [vmem:[%s1842_s5 + $0xb0] sm:$0xff]  }
  0x36   :  { %692 = vmatprep.subr.bf16.mxu1 %v1423_v0  ;;  %v1470_v0 = vld [vmem:[%s1842_s5 + $0xb8] sm:$0xff]  }
  0x37   :  { %726 = vmatpush1.bf16.msra.mxu0 %v1400_v53  ;;  %v1459_v53 = vld [vmem:[%s1842_s5 + $0x68] sm:$0xff]  }
  0x38   :  { %727 = vmatprep.subr.bf16.mxu0 %v1408_v54  ;;  %v1460_v54 = vld [vmem:[%s1842_s5 + $0xe8] sm:$0xff]  }
  0x39   :  { %693 = vmatpush1.bf16.msra.mxu1 %v1421_v2 }
  0x3a   :  { %694 = vmatprep.subr.bf16.mxu1 %v1429_v4 }
  0x3b   :  { %728 = vmatpush1.bf16.msra.mxu0 %v1406_v55  ;;  %v1461_v55 = vld [vmem:[%s1842_s5 + $0x28] sm:$0xff]  }
  0x3c   :  { %729 = vmatprep.subr.bf16.mxu0 %v1414_v57  ;;  %v1463_v57 = vld [vmem:[%s1842_s5 + $0x70] sm:$0xff]  }
  0x3d   :  { %695 = vmatpush1.bf16.msra.mxu1 %v1427_v6 }
  0x3e   :  { %696 = vmatprep.subr.bf16.mxu1 %v1435_v8 }
  0x3f   :  { %730 = vmatpush1.bf16.msra.mxu0 %v1412_v59  ;;  %v1465_v59 = vld [vmem:[%s1842_s5 + $0x30] sm:$0xff]  }
  0x40   :  { %731 = vmatprep.subr.bf16.mxu0 %v1420_v63  ;;  %v1469_v63 = vld [vmem:[%s1842_s5 + $0x38] sm:$0xff]  }
  0x41   :  { %697 = vmatpush1.bf16.msra.mxu1 %v1433_v10 }
  0x42   :  { %1291 = vmatprep.subr.bf16.mxu1 %v1439_v13 }
  0x43   :  { %732 = vmatpush1.bf16.msra.mxu0 %v1418_v62  ;;  %v1468_v62 = vld [vmem:[%s1842_s5 + $0xf8] sm:$0xff]  }
  0x44   :  { %733 = vmatprep.subr.bf16.mxu0 %v1426_v1  ;;  %v502_v1 = vlaneseq }
  0x46   :  { %v503_v2 = vshrl.u32 %v502_v1, 7 }
  0x47   :  { %734 = vmatpush1.bf16.msra.mxu0 %v1424_v3 }
  0x48   :  { %735 = vmatprep.subr.bf16.mxu0 %v1432_v5  ;;  %v504_v3 = vsub.s32 0, %v503_v2  ;;  %v512_v4 = vsub.s32 2, %v503_v2  ;;  %v500_v5 = vld [vmem:[%s1844_s4] sm:$0xf]  ;;  %v508_v6 = vsub.s32 1, %v503_v2 }
  0x4a   :  { %v505_v8 = vrot.slane %v500_v5, %v504_v3  ;;  %v509_v10 = vrot.slane %v500_v5, %v508_v6 }
  0x4b   :  { %736 = vmatpush1.bf16.msra.mxu0 %v1430_v7  ;;  %v516_v7 = vsub.s32 3, %v503_v2 }
  0x4c   :  { %737 = vmatprep.subr.bf16.mxu0 %v1438_v9  ;;  %v513_v9 = vrot.slane %v500_v5, %v512_v4 }
  0x4f   :  { %738 = vmatpush1.bf16.msra.mxu0 %v1436_v11  ;;  %v517_v11 = vrot.slane %v500_v5, %v516_v7 }
  0x50   :  { %1313 = vmatprep.subr.bf16.mxu0 %v1440_v14 }
  0xf5   :  { %v1258_v15 = vpop.f32.mrb[0].mxu0 }
  0xf6   :  { %v1259_v17 = vpop.f32.mrb[1].mxu0 }
  0xf7   :  { %v1260_v18 = vadd.f32 %v1259_v17, %v1258_v15  ;;  %v1261_v19 = vpop.f32.mrb[2].mxu0  ;;  %v1280_v20 = vpop.f32.mrb[0].mxu1 }
  0xf8   :  { %v1262_v21 = vpop.f32.mrb[3].mxu0  ;;  %v1281_v22 = vpop.f32.mrb[1].mxu1 }
  0xf9   :  { %v381_v23 = vadd.f32 %v1260_v18, %v1134_v16  ;;  %v1282_v24 = vadd.f32 %v1281_v22, %v1280_v20  ;;  %v1283_v25 = vpop.f32.mrb[2].mxu1 }
  0xfa   :  { %v1284_v26 = vpop.f32.mrb[3].mxu1 }
  0xfb   :  { %v421_v27 = vadd.f32 %v1282_v24, %v381_v23 }
 0x105   :  { %v460_v28 = vpop.f32.mrb[4].mxu0 }
 0x106   :  { %v461_v29 = vadd.f32 %v460_v28, %v421_v27  ;;  %v1345_v30 = vpop.f32.mrb[5].mxu0 }
 0x107   :  { %v463_v31 = vpop.f32.mrb[6].mxu0 }
 0x108   :  { %v466_v32 = vmax.f32 %v461_v29, 0.0  ;;  %v1346_v33 = vpop.f32.mrb[7].mxu0 }
 0x10a   :  { %v467_v36 = vpack.c.bf16 %v466_v32, %v466_v32 }
 0x10c   :  { %715 = vmatmul.mubr.bf16.vlgmr.msra.gmra.mrb[4].mxu1 %v467_v36  ;;  %756 = vmatmul.mubr.bf16.vlgmr.msra.gmra.mrb[8].mxu0 %v467_v36 }
 0x10d   :  { %1292 = vmatpush3.bf16.msra.mxu1 %v1441_v34  ;;  %1314 = vmatpush3.bf16.msra.mxu0 %v1442_v35  ;;  %v1209_v34 = vld [vmem:[%s1845_s6] ss:$0 sm:$0xff] }
 0x10e   :  { %1293 = vmatprep.subr.bf16.mxu1 %v1443_v37  ;;  %1315 = vmatprep.subr.bf16.mxu0 %v1444_v38  ;;  %v1116_v37 = vand.u32 127, %v502_v1 }
 0x110   :  { %vm1117_vm2 = vcmp.lt.s32.totalorder %v1116_v37, 6 }
 0x111   :  { %1294 = vmatpush3.bf16.msra.mxu1 %v1445_v39  ;;  %1316 = vmatpush3.bf16.msra.mxu0 %v1446_v40 }
 0x112   :  { %1295 = vmatprep.subr.bf16.mxu1 %v1447_v41  ;;  %1317 = vmatprep.subr.bf16.mxu0 %v1448_v42 }
 0x115   :  { %1296 = vmatpush3.bf16.msra.mxu1 %v1449_v43  ;;  %1318 = vmatpush3.bf16.msra.mxu0 %v1450_v44 }
 0x116   :  { %1297 = vmatprep.subr.bf16.mxu1 %v1451_v45  ;;  %1319 = vmatprep.subr.bf16.mxu0 %v1452_v46 }
 0x119   :  { %1298 = vmatpush3.bf16.msra.mxu1 %v1453_v47  ;;  %1320 = vmatpush3.bf16.msra.mxu0 %v1454_v48 }
 0x11a   :  { %1299 = vmatprep.subr.bf16.mxu1 %v1455_v49  ;;  %1321 = vmatprep.subr.bf16.mxu0 %v1456_v50 }
 0x11d   :  { %1300 = vmatpush3.bf16.msra.mxu1 %v1457_v51  ;;  %1322 = vmatpush3.bf16.msra.mxu0 %v1458_v52 }
 0x11e   :  { %1301 = vmatprep.subr.bf16.mxu1 %v1459_v53  ;;  %1323 = vmatprep.subr.bf16.mxu0 %v1460_v54 }
 0x121   :  { %1302 = vmatpush3.bf16.msra.mxu1 %v1461_v55  ;;  %1324 = vmatpush3.bf16.msra.mxu0 %v1462_v56 }
 0x122   :  { %1303 = vmatprep.subr.bf16.mxu1 %v1463_v57  ;;  %1325 = vmatprep.subr.bf16.mxu0 %v1464_v58 }
 0x125   :  { %1304 = vmatpush3.bf16.msra.mxu1 %v1465_v59  ;;  %1326 = vmatpush3.bf16.msra.mxu0 %v1466_v60 }
 0x126   :  { %1305 = vmatprep.subr.bf16.mxu1 %v1467_v61  ;;  %1327 = vmatprep.subr.bf16.mxu0 %v1468_v62 }
 0x129   :  { %1306 = vmatpush3.bf16.msra.mxu1 %v1469_v63  ;;  %1328 = vmatpush3.bf16.msra.mxu0 %v1470_v0 }
 0x1df   :  { %v716_v12 = vpop.f32.mrb[4].mxu1  ;;  %v757_v13 = vpop.f32.mrb[8].mxu0 }
 0x1e0   :  { %v717_v14 = vadd.f32 %v716_v12, %v505_v8  ;;  %v758_v15 = vadd.f32 %v757_v13, %v513_v9  ;;  %v718_v16 = vpop.f32.mrb[5].mxu1  ;;  %v759_v17 = vpop.f32.mrb[9].mxu0 }
 0x1e1   :  { %v719_v18 = vadd.f32 %v718_v16, %v509_v10  ;;  %v760_v19 = vadd.f32 %v759_v17, %v517_v11  ;;  %v720_v20 = vpop.f32.mrb[6].mxu1  ;;  %v761_v21 = vpop.f32.mrb[10].mxu0 }
 0x1e2   :  { %v764_v22 = vmax.f32 %v717_v14, 0.0  ;;  %v766_v23 = vmax.f32 %v758_v15, 0.0  ;;  %v721_v24 = vpop.f32.mrb[7].mxu1  ;;  %v762_v25 = vpop.f32.mrb[11].mxu0 }
 0x1e3   :  { %v765_v26 = vmax.f32 %v719_v18, 0.0  ;;  %v767_v27 = vmax.f32 %v760_v19, 0.0 }
 0x1e4   :  { %v768_v30 = vpack.c.bf16 %v764_v22, %v764_v22  ;;  %v770_v31 = vpack.c.bf16 %v766_v23, %v766_v23 }
 0x1e5   :  { %v769_v28 = vpack.c.bf16 %v765_v26, %v765_v26  ;;  %v771_v29 = vpack.c.bf16 %v767_v27, %v767_v27 }
 0x1e7   :  { %1067 = vmatprep.mubr.bf16.mxu1 %v769_v28  ;;  %1107 = vmatprep.mubr.bf16.mxu0 %v771_v29 }
 0x1e8   :  { %1068 = vmatmul.mubr.bf16.vlgmr.msra.gmra.mrb[8].mxu1 %v768_v30  ;;  %1108 = vmatmul.mubr.bf16.vlgmr.msra.gmra.mrb[12].mxu0 %v770_v31 }
 0x2bb   :  { %v1307_v32 = vpop.f32.mrb[8].mxu1  ;;  %v1329_v33 = vpop.f32.mrb[12].mxu0 }
 0x2bc   :  { %v1308_v35 = vpop.f32.mrb[9].mxu1  ;;  %v1330_v36 = vpop.f32.mrb[13].mxu0 }
 0x2bd   :  { %v1309_v38 = vadd.f32 %v1308_v35, %v1307_v32  ;;  %v1331_v39 = vadd.f32 %v1330_v36, %v1329_v33  ;;  %v1310_v40 = vpop.f32.mrb[10].mxu1  ;;  %v1332_v41 = vpop.f32.mrb[14].mxu0 }
 0x2be   :  { %v1311_v42 = vpop.f32.mrb[11].mxu1  ;;  %v1333_v43 = vpop.f32.mrb[15].mxu0 }
 0x2bf   :  { %v1070_v44 = vadd.f32 %v1309_v38, %v1209_v34 }
 0x2c1   :  { %v1110_v45 = vadd.f32 %v1331_v39, %v1070_v44 }
 0x2c3   :  { %v1118_v46 = vsel %vm1117_vm2, %v1110_v45, -inf }
 0x2c4   :  { %1119 = vmax.xlane.f32.xlu0 %v1118_v46 }
 0x351   :  { %v1120_v47 = vpop.xlane.xlu0 %1119 }
 0x352   :  { %v1121_v48 = vsub.f32 %v1118_v46, %v1120_v47 }
 0x354   :  { %v1122_v49 = vmul.f32 1.442695, %v1121_v48 }
 0x356   :  { %1471 = vpow2.f32 %v1122_v49 }
 0x360   :  { %v1472_v50 = vpop.eup %1471 }
 0x361   :  { %1124 = vadd.xlane.f32.xlu0 %v1472_v50 }
 0x3ee   :  { %v1125_v51 = vpop.xlane.xlu0 %1124 }
 0x3ef   :  { %1473 = vrcp.f32 %v1125_v51 }
 0x3f9   :  { %v1474_v52 = vpop.eup %1473 }
 0x3fa   :  { %v1127_v53 = vmul.f32 %v1474_v52, %v1472_v50 }
 0x3fc   :  { %v1128_v54 = vsel %vm1117_vm2, %v1127_v53, %v1110_v45 }
 0x3fd   :  { %1129 = vst [vmem:[%s1846_s7] sm:$0xff] %v1128_v54 }

</bundles_post_ra>
